<compile_context>
chip_gen: v7x
topology: tpu7x:2x2x1
jax: 0.10.0
libtpu: 0.0.40
codegen_flags: <defaults>
</compile_context>

<pallas_src>
import functools

import jax
import jax.numpy as jnp
from jax.experimental import pallas as pl
from jax.experimental.pallas import tpu as pltpu


_ROW_TARGET = 2048                # target patch rows per grid step
_TILE_BUDGET = 24 * 1024 * 1024   # double-buffered tile budget (bytes)
_MAX_UNROLL = 16                  # max batch elems unrolled inside the kernel
_VMEM_CAP = 48 * 1024 * 1024      # never ask for more (v7x has 64 MiB physical)


def _patch_embed_kernel(nb, x_ref, w_ref, b_ref, o_ref):
    # x_ref: (NB, P, K)  compute-dtype patch tile
    # w_ref: (K, E)      VMEM-resident weight (fetched once)
    # b_ref: (1, E)      VMEM-resident f32 bias (fetched once)
    # o_ref: (NB, P, E)  output tile in final layout
    w = w_ref[...]
    b = b_ref[...]
    for i in range(nb):  # static unroll; nb <= _MAX_UNROLL
        acc = jnp.dot(x_ref[i], w, preferred_element_type=jnp.float32)
        o_ref[i] = (acc + b).astype(o_ref.dtype)


def _pick_batch_block(B, P, K, E, in_bytes, out_bytes):
    """Largest divisor of B meeting row / VMEM / unroll caps (>=2 grid steps
    when possible so v7x can shard the batch axis across its 2 TensorCores)."""
    per_elem = P * K * in_bytes + P * E * out_bytes          # x tile + out tile
    w_bytes = K * E * in_bytes + E * 4
    cap_bytes = max(1, (_TILE_BUDGET // 2 - w_bytes) // max(per_elem, 1))
    cap_rows = max(1, _ROW_TARGET // max(P, 1))
    cap = max(1, min(cap_bytes, cap_rows, _MAX_UNROLL, B))
    if B >= 2:                       # prefer >= 2 grid steps (v7x megacore)
        cap = max(1, min(cap, B // 2))
    nb = 1
    for d in range(1, cap + 1):
        if B % d == 0:
            nb = d
    footprint = 2 * nb * per_elem + 2 * w_bytes
    return nb, footprint


def patch_embed(x, weight, bias, patch_size, flatten=True,
                compute_dtype=jnp.bfloat16, out_dtype=None):
    """Forward pass of PatchEmbed.

    Args:
      x:      (B, C, H, W)   NCHW, matching the PyTorch module input.
      weight: (E, C, Ph, Pw) conv weight (kernel_size == stride == patch_size).
      bias:   (E,)           conv bias.
      patch_size: (Ph, Pw)
      compute_dtype: matmul input dtype (bf16 default; f32 accumulation always).
      out_dtype: output dtype; None -> x.dtype (pass jnp.bfloat16 to halve the
                 output writeback when the consumer wants bf16 activations).
    Returns:
      (out, Hp, Wp) where out is (B, Hp*Wp, E) if flatten else (B, E, Hp, Wp).
    """
    B, C, H, W = x.shape
    E = weight.shape[0]
    Ph, Pw = patch_size
    Hp, Wp = H // Ph, W // Pw
    P = Hp * Wp                      # num_patches per image
    K = C * Ph * Pw
    out_dtype = x.dtype if out_dtype is None else out_dtype

    # --- im2col (wrapper): one fused XLA transpose+convert pass producing the
    # (B, P, K) patch matrix in (C, Ph, Pw) order (matches OIHW flattening).
    # TODO(synk): fold this into the kernel (see module docstring).
    xp = (x.astype(compute_dtype)
            .reshape(B, C, Hp, Ph, Wp, Pw)
            .transpose(0, 2, 4, 1, 3, 5)
            .reshape(B, P, K))
    w_flat = weight.reshape(E, K).T.astype(compute_dtype)    # (K, E), resident
    b_flat = bias.astype(jnp.float32).reshape(1, E)          # (1, E), resident

    in_b = jnp.dtype(compute_dtype).itemsize
    out_b = jnp.dtype(out_dtype).itemsize
    NB, footprint = _pick_batch_block(B, P, K, E, in_b, out_b)
    grid = (B // NB,)

    vmem_limit = int(min(_VMEM_CAP,
                         max(32 * 1024 * 1024, footprint + 8 * 1024 * 1024)))

    cost = pl.CostEstimate(
        flops=2 * B * P * K * E,
        transcendentals=0,
        bytes_accessed=(B * P * K * in_b + K * E * in_b + E * 4
                        + B * P * E * out_b),
    )

    out3 = pl.pallas_call(
        functools.partial(_patch_embed_kernel, NB),
        out_shape=jax.ShapeDtypeStruct((B, P, E), out_dtype),
        grid=grid,
        in_specs=[
            pl.BlockSpec((NB, P, K), lambda i: (i, 0, 0)),   # x patch tiles
            pl.BlockSpec((K, E), lambda i: (0, 0)),          # resident weight
            pl.BlockSpec((1, E), lambda i: (0, 0)),          # resident bias
        ],
        out_specs=pl.BlockSpec((NB, P, E), lambda i: (i, 0, 0)),
        compiler_params=pltpu.CompilerParams(
            dimension_semantics=("parallel",),
            vmem_limit_bytes=vmem_limit),
        cost_estimate=cost,
    )(xp, w_flat, b_flat)

    if flatten:
        out = out3                                   # already (B, P, E)
    else:
        # TODO(synk): emit (B, E, Hp, Wp) directly from the kernel to avoid
        # this transpose copy when flatten=False.
        out = out3.transpose(0, 2, 1).reshape(B, E, Hp, Wp)
    # norm_layer=None -> nn.Identity()
    return out, Hp, Wp


def _reference(x, weight, bias, patch_size):
    # Independent pure-JAX reference: lax conv (NCHW, stride == kernel).
    out = jax.lax.conv_general_dilated(
        x, weight, window_strides=patch_size, padding="VALID",
        dimension_numbers=("NCHW", "OIHW", "NCHW"),
        precision=jax.lax.Precision.HIGHEST)
    out = out + bias.reshape(1, -1, 1, 1)
    B, E, Hp, Wp = out.shape
    out = out.reshape(B, E, Hp * Wp).transpose(0, 2, 1)
    return out, Hp, Wp


if __name__ == "__main__":
    # Small shapes consistent with the module: img_size=16, patch_size=4,
    # in_chans=4, embed_dim=32, batch=2.
    B, C, Himg, Wimg = 2, 4, 16, 16
    Psz = (4, 4)
    E = 32

    key = jax.random.PRNGKey(0)
    kx, kw, kb = jax.random.split(key, 3)
    x = jax.random.normal(kx, (B, C, Himg, Wimg), dtype=jnp.float32)
    weight = jax.random.normal(kw, (E, C, Psz[0], Psz[1]), dtype=jnp.float32) * 0.02
    bias = jax.random.normal(kb, (E,), dtype=jnp.float32) * 0.02

    ref, Hr, Wr = _reference(x, weight, bias, Psz)

    # Default (fast) path: bf16 inputs, f32 MXU accumulation.
    out, Hp, Wp = jax.jit(
        functools.partial(patch_embed, patch_size=Psz, flatten=True)
    )(x, weight, bias)
    out = jax.block_until_ready(out)
    assert out.shape == (B, Hp * Wp, E), out.shape
    assert (Hp, Wp) == (Hr, Wr)
    assert jnp.allclose(out, ref, atol=3e-2, rtol=3e-2), "bf16 path mismatch"

    # Strict-accuracy path: f32 end to end.
    out32, _, _ = jax.jit(
        functools.partial(patch_embed, patch_size=Psz, flatten=True,
                          compute_dtype=jnp.float32)
    )(x, weight, bias)
    out32 = jax.block_until_ready(out32)
    assert jnp.allclose(out32, ref, atol=2e-3, rtol=2e-3), "f32 path mismatch"

    print("KERNEL_OK")
</pallas_src>

<mosaic_0001>
module attributes {stable_mosaic.version = 11 : i64} {
  func.func @_patch_embed_kernel(%arg0: i32, %arg1: memref<1x16x64xbf16, #tpu.memory_space<vmem>>, %arg2: memref<64x32xbf16, #tpu.memory_space<vmem>>, %arg3: memref<1x32xf32, #tpu.memory_space<vmem>>, %arg4: memref<1x16x32xf32, #tpu.memory_space<vmem>>) attributes {dimension_semantics = [#tpu.dimension_semantics<parallel>], iteration_bounds = array<i64: 2>, scalar_prefetch = 0 : i64, scratch_operands = 0 : i64, tpu.core_type = #tpu.core_type<tc>, window_params = [{transform_indices = @transform_0, window_bounds = array<i64: 1, 16, 64>}, {pipeline_mode = #tpu.pipeline_mode<synchronous>, transform_indices = @transform_1, window_bounds = array<i64: 64, 32>}, {pipeline_mode = #tpu.pipeline_mode<synchronous>, transform_indices = @transform_2, window_bounds = array<i64: 1, 32>}, {transform_indices = @transform_3, window_bounds = array<i64: 1, 16, 32>}]} {
    %c0 = arith.constant 0 : index
    %c0_0 = arith.constant 0 : index
    %0 = vector.load %arg2[%c0, %c0_0] : memref<64x32xbf16, #tpu.memory_space<vmem>>, vector<64x32xbf16>
    %c0_1 = arith.constant 0 : index
    %c0_2 = arith.constant 0 : index
    %1 = vector.load %arg3[%c0_1, %c0_2] : memref<1x32xf32, #tpu.memory_space<vmem>>, vector<1x32xf32>
    %c0_3 = arith.constant 0 : index
    %c0_4 = arith.constant 0 : index
    %c0_5 = arith.constant 0 : index
    %2 = vector.load %arg1[%c0_3, %c0_4, %c0_5] : memref<1x16x64xbf16, #tpu.memory_space<vmem>>, vector<1x16x64xbf16>
    %3 = vector.shape_cast %2 : vector<1x16x64xbf16> to vector<16x64xbf16>
    %cst = arith.constant dense<0.000000e+00> : vector<16x32xf32>
    %4 = tpu.matmul %3, %0, %cst {dimension_numbers = #tpu.dot_dimension_numbers<[1], [0], [0], [1], [0, 0, 1, 1], [], []>} : vector<16x64xbf16>, vector<64x32xbf16>, vector<16x32xf32> -> vector<16x32xf32>
    %5 = vector.broadcast %1 : vector<1x32xf32> to vector<16x32xf32>
    %6 = arith.addf %4, %5 : vector<16x32xf32>
    %c0_6 = arith.constant 0 : index
    %c0_7 = arith.constant 0 : index
    %c0_8 = arith.constant 0 : index
    %7 = vector.load %arg4[%c0_6, %c0_7, %c0_8] : memref<1x16x32xf32, #tpu.memory_space<vmem>>, vector<1x16x32xf32>
    %8 = vector.shape_cast %7 : vector<1x16x32xf32> to vector<16x32xf32>
    %9 = vector.shape_cast %6 : vector<16x32xf32> to vector<1x16x32xf32>
    tpu.vector_store %arg4[%c0_6, %c0_7, %c0_8], %9 {strides = array<i32>} : memref<1x16x32xf32, #tpu.memory_space<vmem>>, vector<1x16x32xf32>,
    return
  }
  func.func @transform_0(%arg0: i32) -> (i32, i32, i32) {
    %c0_i32 = arith.constant 0 : i32
    %c0_i32_0 = arith.constant 0 : i32
    %c0_i32_1 = arith.constant 0 : i32
    return %arg0, %c0_i32, %c0_i32_0 : i32, i32, i32
  }
  func.func @transform_1(%arg0: i32) -> (i32, i32) {
    %c0_i32 = arith.constant 0 : i32
    %c0_i32_0 = arith.constant 0 : i32
    %c0_i32_1 = arith.constant 0 : i32
    return %c0_i32, %c0_i32_0 : i32, i32
  }
  func.func @transform_2(%arg0: i32) -> (i32, i32) {
    %c0_i32 = arith.constant 0 : i32
    %c0_i32_0 = arith.constant 0 : i32
    %c0_i32_1 = arith.constant 0 : i32
    return %c0_i32, %c0_i32_0 : i32, i32
  }
  func.func @transform_3(%arg0: i32) -> (i32, i32, i32) {
    %c0_i32 = arith.constant 0 : i32
    %c0_i32_0 = arith.constant 0 : i32
    %c0_i32_1 = arith.constant 0 : i32
    return %arg0, %c0_i32, %c0_i32_0 : i32, i32, i32
  }
}

</mosaic_0001>

<bundles_post_ra>
// kernel: patch_embed.1
= control target key start
LH: loop header
LB: loop body
LE: loop exit
PB: predicated region body
PF: predicated region fallthrough
CT: control target
= control target key end

     0   :  { %8 = vsyncpa [#allocation3], 0  ;;  %s633_s0 = inlined_call_operand.vmem [shape: bf16[2,16,64], index: 0, kind: input, shape index: {}]   ;;  %s634_s1 = inlined_call_operand.vmem [shape: bf16[64,32], index: 1, kind: input, shape index: {}]   ;;  %s635_s2 = inlined_call_operand.vmem [shape: f32[1,32], index: 2, kind: input, shape index: {}]   ;;  %s636_s3 = inlined_call_operand.hbm [shape: f32[2,16,32], index: 3, kind: output, shape index: {}]  }
   0x1   :  { %10 = vsyncpa [#allocation3 + $0x1], 0  ;;  %s515_s12 = smov 0   ;;  %s517_s13 = smov 0  }
   0x2   :  { %s519_s14 = smov 0   ;;  %s521_s15 = smov 0  }
   0x3 LB: > { %s536_s16 = sadd.s32 4294967295, %s488_s15   ;;  %s340_s17 = sadd.s32 4294967294, %s488_s15   ;;  %s488_s15 = sphi %s521_s15, %s642_s15   ;;  %s484_s14 = sphi %s519_s14, %s641_s14   ;;  %s480_s13 = sphi %s517_s13, %s640_s13   ;;  %s476_s12 = sphi %s515_s12, %s639_s12  }
   0x4   : > { %s540_s18 = sadd.s32 1, %s488_s15   ;;  %s91_s19 = sadd.s32 1, %s484_s14 }
   0x5   : > { %s88_s20 = ssub.s32 %s488_s15, %s540_s18  ;;  %p101_p0 = scmp.ne.s32.totalorder %s484_s14, %s480_s13 }
   0x6   : > { %p89_p1 = scmp.eq.s32.totalorder %s88_s20, 0  ;;  %p102_p2 = scmp.eq.s32.totalorder %s536_s16, 1 }
   0x7   : > { %p107_p3 = scmp.ne.s32.totalorder %s480_s13, %s476_s12  ;;  %p108_p4 = scmp.eq.s32.totalorder %s340_s17, 1 }
   0x8   : > { %s551_s21 = scalar_select %p89_p1, %s484_s14, %s91_s19  }
   0x9   : > { %p553_p5 = por %p102_p2, %p101_p0  ;;  %p557_p6 = por %p108_p4, %p107_p3 }
   0xa   : > { %p343_p7 = scmp.ge.s32.totalorder %s488_s15, 1  ;;  %p140_p8 = scmp.lt.s32.totalorder %s488_s15, 3 }
   0xc   : > { %p141_p9 = pnand %p343_p7, %p140_p8 }
   0xd   : > { %v421_v0 = vld [vmem:[%s634_s1] sm:$0xff] (!%p141_p9)   ;;  %v490_v1 = vmov (!%p141_p9), 0.0   ;;  %v422_v2 = vld [vmem:[%s634_s1 + $0x8] sm:$0xff] (!%p141_p9)   ;;  %vm491_vm0 = vmmov (!%p141_p9), 0   ;;  %p164_p10 = scmp.lt.s32.totalorder (!%p141_p9), %s536_s16, 1  ;;  %v423_v3 = vld [vmem:[%s634_s1 + $0x10] sm:$0xff] (!%p141_p9)  }
   0xe   : > { %144 = sbr.rel (%p141_p9) target bundleno = 261 (0x105), region = 32  ;;  %366 = vmatprep.subr.bf16.mxu0 (!%p141_p9), %v490_v1  ;;  %374 = vmatprep.mubr.msk.bf16.mxu0 (!%p141_p9), %vm491_vm0, %v490_v1  ;;  %v424_v4 = vld [vmem:[%s634_s1 + $0x18] sm:$0xff] (!%p141_p9)   ;;  %vm216_vm1 = vcmask (!%p141_p9), 523264   ;;  %s161_s10 = sand.u32 (!%p141_p9), 1, %s480_s13   ;;  %v347_v6 = vld [vmem:[%s635_s2] ss:$0 sm:$0xff] (!%p141_p9) }
   0xf   : > { %367 = vmatpush3.bf16.msra.mxu0 (!%p141_p9), %v421_v0  ;;  %s344_s11 = sshll.u32 (!%p141_p9), %s161_s10, 4  ;;  %s360_s25 = sshll.u32 (!%p141_p9), %s536_s16, 8  ;;  %vm261_vm2 = vcmask (!%p141_p9), 261120  }
  0x10   : > { %368 = vmatprep.subr.bf16.mxu0 (!%p141_p9), %v490_v1  ;;  %s163_s20 = scalar_lea.vmem (!%p141_p9), [#allocation2], %s344_s11  ;;  %s492_s30 = smov (!%p141_p9), [#allocation2]  }
  0x11   : > { %s278_s24 = sshll.u32 (!%p141_p9), %s163_s20, 4  ;;  %s585_s24 = int_to_ptr.vmem [resolvable:$true] %s278_s24 }
  0x12   : > { %s426_s29 = scalar_lea.vmem (!%p141_p9), %s585_s24, 256 }
  0x13   : > { %369 = vmatpush3.bf16.msra.mxu0 (!%p141_p9), %v422_v2  ;;  %p427_p11 = scmp.ne.s32.totalorder (!%p141_p9), %s585_s24, %s426_s29 }
  0x14   : > { %370 = vmatprep.subr.bf16.mxu0 (!%p141_p9), %v490_v1 }
  0x15   : > { %s165_s28 = scalar_select %p164_p10, %s536_s16, 1 }
  0x16   : > { %s592_s16 = scalar_lea.sflag [#allocation3], %s161_s10  ;;  %p428_p12 = pnand %p427_p11, %p553_p5 }
  0x17   : > { %s359_s4 = sshll.u32 %s165_s28, 3  ;;  %371 = vmatpush3.bf16.msra.mxu0 %v423_v3  ;;  %s590_s28 = scalar_lea.hbm %s636_s3, %s360_s25 }
  0x18   : > { %s168_s7 = scalar_lea.vmem %s633_s0, %s359_s4  ;;  %372 = vmatprep.subr.bf16.mxu0 %v490_v1  ;;  %p429_p13 = pneg %p428_p12 }
  0x19   : > { %v425_v5 = vld [vmem:[%s168_s7] sm:$0xff]   ;;  %s430_s4 = sshll.u32 %s492_s30, 4  ;;  %s431_s4 = int_to_ptr.vmem [resolvable:$false] %s430_s4 }
  0x1a   : > { %s432_s5 = scalar_lea.vmem %s431_s4, 512  ;;  %p433_p0 = scmp.lt.s32.totalorder %s585_s24, %s431_s4 }
  0x1b   : > { %373 = vmatpush3.bf16.msra.mxu0 %v424_v4  ;;  %p434_p1 = scmp.lt.s32.totalorder %s432_s5, %s426_s29 }
  0x1d   : > { %p435_p2 = por %p434_p1, %p433_p0 }
  0x1e   : > { %375 = vmatmul.mubr.msk.bf16.vlgmr.msra.gmra.mrb[0].mxu0 %vm216_vm1, %v425_v5 }
  0x1f   : > { %p436_p3 = pnand %p435_p2, %p429_p13 }
  0xf1   : > { %v254_v7 = vpop.f32.mrb[0].mxu0 }
  0xf2   : > { %v255_v8 = vadd.f32 %v347_v6, %v254_v7  ;;  %v376_v9 = vpop.f32.mrb[1].mxu0 }
  0xf3   : > { %v257_v10 = vpop.f32.mrb[2].mxu0 }
  0xf4   : > { %262 = vst.msk [vmem:[%s163_s20] sm:$0xff] %vm261_vm2, %v255_v8  ;;  %v258_v11 = vadd.f32 %v347_v6, %v257_v10  ;;  %v377_v12 = vpop.f32.mrb[3].mxu0 }
  0xf6   : > { %263 = vst.msk [vmem:[%s163_s20 + $0x8] sm:$0xff] %vm261_vm2, %v258_v11 }
  0xf7   : > { %439 = shalt.err (!%p436_p3)
}
  0xf8   : > { %s440_s6 = scalar_lea.hbm %s590_s28, 256  ;;  %s444_s9 = scalar_lea.hbm %s636_s3, 512 }
  0xf9   : > { %p441_p4 = scmp.ne.s32.totalorder %s590_s28, %s440_s6  ;;  %p445_p9 = scmp.lt.u32.totalorder %s590_s28, %s636_s3 }
  0xfa   : > { %p446_p10 = scmp.lt.u32.totalorder %s444_s9, %s440_s6  ;;  %p448_p12 = scmp.lt.u32.totalorder %s440_s6, %s590_s28 }
  0xfb   : > { %p442_p7 = pnand %p441_p4, %p553_p5 }
  0xfc   : > { %p447_p11 = por %p446_p10, %p445_p9 }
  0xfd   : > { %p443_p8 = pneg %p442_p7 }
  0xfe   : > { %p449_p13 = por %p448_p12, %p447_p11 }
 0x100   : > { %p450_p0 = pnand %p449_p13, %p443_p8 }
 0x102   : > { %453 = shalt.err (!%p450_p0)
}
 0x103   : > { %s493_s17 = smov 128   ;;  %s494_s19 = smov 8  }
 0x104   : > { %378 = dma.vmem_to_hbm [thread:$0]  (%p553_p5), %s585_s24, 256, %s590_s28, %s592_s16, %s493_s17, %s493_s17, %s494_s19  }
 0x105 PF: > { %p384_p1 = scmp.ge.s32.totalorder %s488_s15, 2  ;;  %s293_s20 = sand.u32 1, %s476_s12  }
 0x106   : > { %s294_s25 = scalar_lea.sflag [#allocation3], %s293_s20 }
 0x107   : > { %p381_p2 = pnand %p384_p1, %p557_p6 }
 0x109   : > { %471 = dma.done.wait (!%p381_p2), %s294_s25, 256  }
 0x10a   : > { %473 = vsyncadd (!%p381_p2), %s294_s25, 4294967040  ;;  %p13_p3 = scmp.ge.s32.totalorder %s540_s18, 4   ;;  %s639_s12 = smov %s480_s13 }
 0x10b   : > { %s640_s13 = smov %s484_s14  ;;  %s641_s14 = smov %s551_s21 }
 0x10c   : > { %s642_s15 = smov %s540_s18  ;;  %15 = sbr.rel (!%p13_p3) target bundleno = 3 (0x3), region = 67 }
 0x113   :  { %299 = vsyncpa [#allocation3], 1 }
 0x114   :  { %301 = vsyncpa [#allocation3 + $0x1], 1 }

</bundles_post_ra>
